<compile_context>
chip_gen: v5e
topology: v5e:2x2
jax: 0.10.0
libtpu: 0.0.40
codegen_flags: <defaults>
</compile_context>

<pallas_src>
import functools

import jax
import jax.numpy as jnp
from jax.experimental import pallas as pl
from jax.experimental.pallas import tpu as pltpu


def _block_kernel(x_ref, g1_ref, b1_ref, wqkv_ref, wp_ref, bp_ref,
                  g2_ref, b2_ref, w1_ref, bb1_ref, w2_ref, bb2_ref,
                  o_ref, attn_ref, *, bt, n_heads, head_size, eps):
    T = x_ref.shape[1]
    C = x_ref.shape[2]
    M = bt * T

    # Fold all Bt batch rows of this block into one (M, C) slab so the
    # projection / MLP matmuls fill the MXU M dimension.
    x = x_ref[...].reshape(M, C)

    # ---------------- LayerNorm 1 (two-pass variance) ----------------
    mu = jnp.mean(x, axis=-1, keepdims=True)
    xc = x - mu
    var = jnp.mean(xc * xc, axis=-1, keepdims=True)
    h = xc * jax.lax.rsqrt(var + eps) * g1_ref[0] + b1_ref[0]

    # --------- fused QKV projection: one lane-dense bf16 (M,C)@(C,3C) -------
    qkv = jnp.dot(h.astype(jnp.bfloat16), wqkv_ref[...],
                  preferred_element_type=jnp.float32)            # (M, 3C) f32

    # Causal additive bias / scale hoisted out of the batch/head loops.
    # NOTE: the reference scales by C**-0.5 (n_embd), *not* head_size**-0.5.
    scale = jnp.float32(C) ** jnp.float32(-0.5)
    row = jax.lax.broadcasted_iota(jnp.int32, (T, T), 0)
    col = jax.lax.broadcasted_iota(jnp.int32, (T, T), 1)
    causal_bias = jnp.where(row >= col, jnp.float32(0.0), jnp.float32(-1e30))

    # --------- per-(batch-row, head) attention; heads write into a slab -----
    for b in range(bt):
        r0 = b * T
        for hh in range(n_heads):
            lo = hh * head_size
            q = qkv[r0:r0 + T, lo:lo + head_size].astype(jnp.bfloat16)
            k = qkv[r0:r0 + T, C + lo:C + lo + head_size].astype(jnp.bfloat16)
            v = qkv[r0:r0 + T, 2 * C + lo:2 * C + lo + head_size].astype(
                jnp.bfloat16)
            wei = jnp.dot(q, k.T, preferred_element_type=jnp.float32) * scale
            wei = wei + causal_bias
            wei = wei - jnp.max(wei, axis=-1, keepdims=True)
            p = jnp.exp(wei)
            inv = pl.reciprocal(jnp.sum(p, axis=-1, keepdims=True), approx=True)
            p = (p * inv).astype(jnp.bfloat16)
            attn_ref[r0:r0 + T, lo:lo + head_size] = jnp.dot(
                p, v, preferred_element_type=jnp.float32)

    # Single (M,C)@(C,C) output projection over the concatenated-head slab.
    sa = jnp.dot(attn_ref[...].astype(jnp.bfloat16), wp_ref[...],
                 preferred_element_type=jnp.float32) + bp_ref[0]
    # TODO(synk): dropout on attention weights / projection is identity (p=0).
    x = x + sa

    # ---------------- LayerNorm 2 (two-pass variance) ----------------
    mu2 = jnp.mean(x, axis=-1, keepdims=True)
    xc2 = x - mu2
    var2 = jnp.mean(xc2 * xc2, axis=-1, keepdims=True)
    h2 = xc2 * jax.lax.rsqrt(var2 + eps) * g2_ref[0] + b2_ref[0]

    # ---------------- FeedForward (bf16 matmuls, f32 accumulate) ------------
    ff = jnp.dot(h2.astype(jnp.bfloat16), w1_ref[...],
                 preferred_element_type=jnp.float32) + bb1_ref[0]
    ff = jnp.maximum(ff, jnp.float32(0.0))
    ff = jnp.dot(ff.astype(jnp.bfloat16), w2_ref[...],
                 preferred_element_type=jnp.float32) + bb2_ref[0]
    # TODO(synk): MLP dropout is identity (p=0).
    o_ref[...] = (x + ff).reshape(bt, T, C)


@functools.lru_cache(maxsize=1)
def _single_buffered_weights_supported():
    """Compile-time capability check: does this JAX build accept
    BlockSpec(pipeline_mode=pl.Buffered(1))?  Runs once on a tiny dummy kernel
    so the real kernel is never probed / re-executed."""
    if not hasattr(pl, "Buffered"):
        return False
    try:
        spec = pl.BlockSpec((8, 128), lambda i: (0, 0),
                            pipeline_mode=pl.Buffered(1))
    except TypeError:
        return False

    def _k(w_ref, o_ref):
        o_ref[...] = w_ref[...] * 2.0

    try:
        fn = pl.pallas_call(
            _k,
            out_shape=jax.ShapeDtypeStruct((8, 128), jnp.float32),
            grid=(2,),
            in_specs=[spec],
            out_specs=pl.BlockSpec((8, 128), lambda i: (0, 0)),
        )
        jax.jit(fn).lower(jnp.zeros((8, 128), jnp.float32)).compile()
        return True
    except Exception:
        return False


def prepare_params(params):
    """One-time weight preparation (NOT per forward call): fuse wq|wk|wv
    column-wise and pre-cast matmul weights to bf16 (MXU-native).  LayerNorm
    params and biases stay f32."""
    return {
        "g1": params["g1"], "b1": params["b1"],
        "wqkv": jnp.concatenate([params["wq"], params["wk"], params["wv"]],
                                axis=1).astype(jnp.bfloat16),
        "wp": params["wp"].astype(jnp.bfloat16), "bp": params["bp"],
        "g2": params["g2"], "b2": params["b2"],
        "w1": params["w1"].astype(jnp.bfloat16), "bb1": params["bb1"],
        "w2": params["w2"].astype(jnp.bfloat16), "bb2": params["bb2"],
    }


def _choose_batch_tile(B, T, target_rows=256):
    # Fold enough batch rows per block to fill the MXU M dimension
    # (~256 rows on v6e/v7x; 128 already fills v5e's MXU) ...
    bt = max(1, min(B, target_rows // max(T, 1)))
    if B >= 2:
        # ... but keep >= 2 grid steps so both v7x TensorCores get work.
        bt = max(1, min(bt, B // 2))
    while B % bt != 0:  # bt must divide B for the (bt, T, C) BlockSpec
        bt -= 1
    return bt


def block_forward(x, prepped, n_heads):
    B, T, C = x.shape
    head_size = C // n_heads
    bt = _choose_batch_tile(B, T)
    kernel = functools.partial(_block_kernel, bt=bt, n_heads=n_heads,
                               head_size=head_size, eps=1e-5)

    consts = [prepped["g1"], prepped["b1"], prepped["wqkv"], prepped["wp"],
              prepped["bp"], prepped["g2"], prepped["b2"], prepped["w1"],
              prepped["bb1"], prepped["w2"], prepped["bb2"]]

    single_buffer = _single_buffered_weights_supported()

    def const_spec(shape):
        nd = len(shape)
        idx = lambda b, _nd=nd: (0,) * _nd
        if single_buffer:
            # Grid-invariant weights: no need to double-buffer across batch.
            return pl.BlockSpec(shape, idx, pipeline_mode=pl.Buffered(1))
        return pl.BlockSpec(shape, idx)

    in_specs = [pl.BlockSpec((bt, T, C), lambda b: (b, 0, 0))]
    in_specs += [const_spec(p.shape) for p in consts]

    # NOTE: no block_until_ready here — callers keep async dispatch.
    return pl.pallas_call(
        kernel,
        out_shape=jax.ShapeDtypeStruct((B, T, C), jnp.float32),
        grid=(B // bt,),
        in_specs=in_specs,
        out_specs=pl.BlockSpec((bt, T, C), lambda b: (b, 0, 0)),
        scratch_shapes=[pltpu.VMEM((bt * T, C), jnp.float32)],
        compiler_params=pltpu.CompilerParams(
            dimension_semantics=("parallel",),
            vmem_limit_bytes=32 * 1024 * 1024),
    )(x, *consts)


# ------------------ pure-JAX reference (for verification) ------------------
def block_reference(x, params, n_heads):
    B, T, C = x.shape
    hs = C // n_heads

    def ln(z, g, b):
        mu = z.mean(-1, keepdims=True)
        var = ((z - mu) ** 2).mean(-1, keepdims=True)
        return (z - mu) / jnp.sqrt(var + 1e-5) * g + b

    h = ln(x, params["g1"][0], params["b1"][0])
    causal = jnp.tril(jnp.ones((T, T), bool))
    outs = []
    for hh in range(n_heads):
        sl = slice(hh * hs, (hh + 1) * hs)
        q = h @ params["wq"][:, sl]
        k = h @ params["wk"][:, sl]
        v = h @ params["wv"][:, sl]
        wei = q @ jnp.swapaxes(k, -1, -2) * (C ** -0.5)
        wei = jnp.where(causal, wei, -jnp.inf)
        wei = jax.nn.softmax(wei, axis=-1)
        outs.append(wei @ v)
    sa = jnp.concatenate(outs, axis=-1) @ params["wp"] + params["bp"][0]
    x = x + sa
    h2 = ln(x, params["g2"][0], params["b2"][0])
    ff = jnp.maximum(h2 @ params["w1"] + params["bb1"][0], 0.0)
    ff = ff @ params["w2"] + params["bb2"][0]
    return x + ff


def init_params(key, n_embd):
    C = n_embd
    ks = jax.random.split(key, 9)

    def lin(k, fan_in, shape):
        bound = 1.0 / (fan_in ** 0.5)
        return jax.random.uniform(k, shape, jnp.float32, -bound, bound)

    return {
        "g1": jnp.ones((1, C), jnp.float32),
        "b1": jnp.zeros((1, C), jnp.float32),
        "wq": lin(ks[0], C, (C, C)),
        "wk": lin(ks[1], C, (C, C)),
        "wv": lin(ks[2], C, (C, C)),
        "wp": lin(ks[3], C, (C, C)),
        "bp": lin(ks[4], C, (1, C)),
        "g2": jnp.ones((1, C), jnp.float32),
        "b2": jnp.zeros((1, C), jnp.float32),
        "w1": lin(ks[5], C, (C, 4 * C)),
        "bb1": lin(ks[6], C, (1, 4 * C)),
        "w2": lin(ks[7], 4 * C, (4 * C, C)),
        "bb2": lin(ks[8], 4 * C, (1, C)),
    }


if __name__ == "__main__":
    B, T, C, n_heads = 2, 8, 32, 4  # block_size == T == 8
    key = jax.random.PRNGKey(0)
    kx, kp = jax.random.split(key)
    x = jax.random.normal(kx, (B, T, C), jnp.float32)
    params = init_params(kp, C)
    prepped = prepare_params(params)   # one-time weight prep (fuse + bf16)

    out = block_forward(x, prepped, n_heads)
    out = jax.block_until_ready(out)

    ref = block_reference(x, params, n_heads)
    assert out.shape == (B, T, C)
    # bf16 matmul operands + approx reciprocal -> slightly looser tolerance
    # vs the pure-f32 reference.
    assert jnp.allclose(out, ref, atol=5e-2, rtol=5e-2), (
        float(jnp.max(jnp.abs(out - ref))))
    print("KERNEL_OK")
</pallas_src>

<mosaic_0001>
module attributes {stable_mosaic.version = 11 : i64} {
  func.func @_block_kernel(%arg0: i32, %arg1: memref<1x8x32xf32, #tpu.memory_space<vmem>>, %arg2: memref<1x32xf32, #tpu.memory_space<vmem>>, %arg3: memref<1x32xf32, #tpu.memory_space<vmem>>, %arg4: memref<32x96xbf16, #tpu.memory_space<vmem>>, %arg5: memref<32x32xbf16, #tpu.memory_space<vmem>>, %arg6: memref<1x32xf32, #tpu.memory_space<vmem>>, %arg7: memref<1x32xf32, #tpu.memory_space<vmem>>, %arg8: memref<1x32xf32, #tpu.memory_space<vmem>>, %arg9: memref<32x128xbf16, #tpu.memory_space<vmem>>, %arg10: memref<1x128xf32, #tpu.memory_space<vmem>>, %arg11: memref<128x32xbf16, #tpu.memory_space<vmem>>, %arg12: memref<1x32xf32, #tpu.memory_space<vmem>>, %arg13: memref<1x8x32xf32, #tpu.memory_space<vmem>>, %arg14: memref<8x32xf32, #tpu.memory_space<vmem>>) attributes {dimension_semantics = [#tpu.dimension_semantics<parallel>], iteration_bounds = array<i64: 2>, scalar_prefetch = 0 : i64, scratch_operands = 1 : i64, tpu.core_type = #tpu.core_type<tc>, window_params = [{transform_indices = @transform_0, window_bounds = array<i64: 1, 8, 32>}, {pipeline_mode = #tpu.pipeline_mode<synchronous>, transform_indices = @transform_1, window_bounds = array<i64: 1, 32>}, {pipeline_mode = #tpu.pipeline_mode<synchronous>, transform_indices = @transform_2, window_bounds = array<i64: 1, 32>}, {pipeline_mode = #tpu.pipeline_mode<synchronous>, transform_indices = @transform_3, window_bounds = array<i64: 32, 96>}, {pipeline_mode = #tpu.pipeline_mode<synchronous>, transform_indices = @transform_4, window_bounds = array<i64: 32, 32>}, {pipeline_mode = #tpu.pipeline_mode<synchronous>, transform_indices = @transform_5, window_bounds = array<i64: 1, 32>}, {pipeline_mode = #tpu.pipeline_mode<synchronous>, transform_indices = @transform_6, window_bounds = array<i64: 1, 32>}, {pipeline_mode = #tpu.pipeline_mode<synchronous>, transform_indices = @transform_7, window_bounds = array<i64: 1, 32>}, {pipeline_mode = #tpu.pipeline_mode<synchronous>, transform_indices = @transform_8, window_bounds = array<i64: 32, 128>}, {pipeline_mode = #tpu.pipeline_mode<synchronous>, transform_indices = @transform_9, window_bounds = array<i64: 1, 128>}, {pipeline_mode = #tpu.pipeline_mode<synchronous>, transform_indices = @transform_10, window_bounds = array<i64: 128, 32>}, {pipeline_mode = #tpu.pipeline_mode<synchronous>, transform_indices = @transform_11, window_bounds = array<i64: 1, 32>}, {transform_indices = @transform_12, window_bounds = array<i64: 1, 8, 32>}]} {
    %c0 = arith.constant 0 : index
    %c0_0 = arith.constant 0 : index
    %c0_1 = arith.constant 0 : index
    %0 = vector.load %arg1[%c0, %c0_0, %c0_1] : memref<1x8x32xf32, #tpu.memory_space<vmem>>, vector<1x8x32xf32>
    %1 = vector.shape_cast %0 : vector<1x8x32xf32> to vector<8x32xf32>
    %cst = arith.constant dense<0.000000e+00> : vector<8xf32>
    %2 = vector.multi_reduction <add>, %1, %cst [1] : vector<8x32xf32> to vector<8xf32>
    %3 = vector.shape_cast %2 : vector<8xf32> to vector<8x1xf32>
    %cst_2 = arith.constant 3.200000e+01 : f32
    %4 = vector.broadcast %cst_2 : f32 to vector<8x1xf32>
    %5 = arith.divf %3, %4 : vector<8x1xf32>
    %6 = vector.broadcast %5 : vector<8x1xf32> to vector<8x32xf32>
    %7 = arith.subf %1, %6 : vector<8x32xf32>
    %8 = arith.mulf %7, %7 : vector<8x32xf32>
    %cst_3 = arith.constant dense<0.000000e+00> : vector<8xf32>
    %9 = vector.multi_reduction <add>, %8, %cst_3 [1] : vector<8x32xf32> to vector<8xf32>
    %10 = vector.shape_cast %9 : vector<8xf32> to vector<8x1xf32>
    %cst_4 = arith.constant 3.200000e+01 : f32
    %11 = vector.broadcast %cst_4 : f32 to vector<8x1xf32>
    %12 = arith.divf %10, %11 : vector<8x1xf32>
    %cst_5 = arith.constant 9.99999974E-6 : f32
    %13 = vector.broadcast %cst_5 : f32 to vector<8x1xf32>
    %14 = arith.addf %12, %13 : vector<8x1xf32>
    %15 = math.rsqrt %14 : vector<8x1xf32>
    %16 = vector.broadcast %15 : vector<8x1xf32> to vector<8x32xf32>
    %17 = arith.mulf %7, %16 : vector<8x32xf32>
    %c0_6 = arith.constant 0 : index
    %c0_7 = arith.constant 0 : index
    %18 = vector.load %arg2[%c0_6, %c0_7] : memref<1x32xf32, #tpu.memory_space<vmem>>, vector<1x32xf32>
    %19 = vector.shape_cast %18 : vector<1x32xf32> to vector<32xf32>
    %20 = vector.shape_cast %19 : vector<32xf32> to vector<1x32xf32>
    %21 = vector.broadcast %20 : vector<1x32xf32> to vector<8x32xf32>
    %22 = arith.mulf %17, %21 : vector<8x32xf32>
    %c0_8 = arith.constant 0 : index
    %c0_9 = arith.constant 0 : index
    %23 = vector.load %arg3[%c0_8, %c0_9] : memref<1x32xf32, #tpu.memory_space<vmem>>, vector<1x32xf32>
    %24 = vector.shape_cast %23 : vector<1x32xf32> to vector<32xf32>
    %25 = vector.shape_cast %24 : vector<32xf32> to vector<1x32xf32>
    %26 = vector.broadcast %25 : vector<1x32xf32> to vector<8x32xf32>
    %27 = arith.addf %22, %26 : vector<8x32xf32>
    %28 = arith.truncf %27 : vector<8x32xf32> to vector<8x32xbf16>
    %c0_10 = arith.constant 0 : index
    %c0_11 = arith.constant 0 : index
    %29 = vector.load %arg4[%c0_10, %c0_11] : memref<32x96xbf16, #tpu.memory_space<vmem>>, vector<32x96xbf16>
    %cst_12 = arith.constant dense<0.000000e+00> : vector<8x96xf32>
    %30 = tpu.matmul %28, %29, %cst_12 {dimension_numbers = #tpu.dot_dimension_numbers<[1], [0], [0], [1], [0, 0, 1, 1], [], []>} : vector<8x32xbf16>, vector<32x96xbf16>, vector<8x96xf32> -> vector<8x96xf32>
    %cst_13 = arith.constant 3.200000e+01 : f32
    %cst_14 = arith.constant -5.000000e-01 : f32
    %31 = math.powf %cst_13, %cst_14 : f32
    %32 = tpu.iota {dimensions = array<i32: 0>} : vector<8x8xi32>
    %33 = tpu.iota {dimensions = array<i32: 1>} : vector<8x8xi32>
    %34 = arith.cmpi sge, %32, %33 : vector<8x8xi32>
    %cst_15 = arith.constant 0.000000e+00 : f32
    %cst_16 = arith.constant -1.000000e+30 : f32
    %35 = vector.broadcast %cst_15 : f32 to vector<8x8xf32>
    %36 = vector.broadcast %cst_16 : f32 to vector<8x8xf32>
    %37 = arith.select %34, %35, %36 : vector<8x8xi1>, vector<8x8xf32>
    %38 = vector.extract_strided_slice %30 {offsets = [0, 0], sizes = [8, 8], strides = [1, 1]} : vector<8x96xf32> to vector<8x8xf32>
    %39 = arith.truncf %38 : vector<8x8xf32> to vector<8x8xbf16>
    %40 = vector.extract_strided_slice %30 {offsets = [0, 32], sizes = [8, 8], strides = [1, 1]} : vector<8x96xf32> to vector<8x8xf32>
    %41 = arith.truncf %40 : vector<8x8xf32> to vector<8x8xbf16>
    %42 = vector.extract_strided_slice %30 {offsets = [0, 64], sizes = [8, 8], strides = [1, 1]} : vector<8x96xf32> to vector<8x8xf32>
    %43 = arith.truncf %42 : vector<8x8xf32> to vector<8x8xbf16>
    %44 = tpu.transpose %41, [1, 0] : vector<8x8xbf16> -> vector<8x8xbf16>
    %cst_17 = arith.constant dense<0.000000e+00> : vector<8x8xf32>
    %45 = tpu.matmul %39, %44, %cst_17 {dimension_numbers = #tpu.dot_dimension_numbers<[1], [0], [0], [1], [0, 0, 1, 1], [], []>} : vector<8x8xbf16>, vector<8x8xbf16>, vector<8x8xf32> -> vector<8x8xf32>
    %46 = vector.broadcast %31 : f32 to vector<8x8xf32>
    %47 = arith.mulf %45, %46 : vector<8x8xf32>
    %48 = arith.addf %47, %37 : vector<8x8xf32>
    %cst_18 = arith.constant dense<0xFF800000> : vector<8xf32>
    %49 = vector.multi_reduction <maximumf>, %48, %cst_18 [1] : vector<8x8xf32> to vector<8xf32>
    %50 = vector.shape_cast %49 : vector<8xf32> to vector<8x1xf32>
    %51 = vector.broadcast %50 : vector<8x1xf32> to vector<8x8xf32>
    %52 = arith.subf %48, %51 : vector<8x8xf32>
    %53 = math.exp %52 : vector<8x8xf32>
    %cst_19 = arith.constant dense<0.000000e+00> : vector<8xf32>
    %54 = vector.multi_reduction <add>, %53, %cst_19 [1] : vector<8x8xf32> to vector<8xf32>
    %55 = vector.shape_cast %54 : vector<8xf32> to vector<8x1xf32>
    %56 = tpu.reciprocal %55 {approx = true} : vector<8x1xf32> -> vector<8x1xf32>
    %57 = vector.broadcast %56 : vector<8x1xf32> to vector<8x8xf32>
    %58 = arith.mulf %53, %57 : vector<8x8xf32>
    %59 = arith.truncf %58 : vector<8x8xf32> to vector<8x8xbf16>
    %cst_20 = arith.constant dense<0.000000e+00> : vector<8x8xf32>
    %60 = tpu.matmul %59, %43, %cst_20 {dimension_numbers = #tpu.dot_dimension_numbers<[1], [0], [0], [1], [0, 0, 1, 1], [], []>} : vector<8x8xbf16>, vector<8x8xbf16>, vector<8x8xf32> -> vector<8x8xf32>
    %c0_21 = arith.constant 0 : index
    %c0_22 = arith.constant 0 : index
    %61 = vector.load %arg14[%c0_21, %c0_22] : memref<8x32xf32, #tpu.memory_space<vmem>>, vector<8x8xf32>
    tpu.vector_store %arg14[%c0_21, %c0_22], %60 {strides = array<i32>} : memref<8x32xf32, #tpu.memory_space<vmem>>, vector<8x8xf32>,
    %62 = vector.extract_strided_slice %30 {offsets = [0, 8], sizes = [8, 8], strides = [1, 1]} : vector<8x96xf32> to vector<8x8xf32>
    %63 = arith.truncf %62 : vector<8x8xf32> to vector<8x8xbf16>
    %64 = vector.extract_strided_slice %30 {offsets = [0, 40], sizes = [8, 8], strides = [1, 1]} : vector<8x96xf32> to vector<8x8xf32>
    %65 = arith.truncf %64 : vector<8x8xf32> to vector<8x8xbf16>
    %66 = vector.extract_strided_slice %30 {offsets = [0, 72], sizes = [8, 8], strides = [1, 1]} : vector<8x96xf32> to vector<8x8xf32>
    %67 = arith.truncf %66 : vector<8x8xf32> to vector<8x8xbf16>
    %68 = tpu.transpose %65, [1, 0] : vector<8x8xbf16> -> vector<8x8xbf16>
    %cst_23 = arith.constant dense<0.000000e+00> : vector<8x8xf32>
    %69 = tpu.matmul %63, %68, %cst_23 {dimension_numbers = #tpu.dot_dimension_numbers<[1], [0], [0], [1], [0, 0, 1, 1], [], []>} : vector<8x8xbf16>, vector<8x8xbf16>, vector<8x8xf32> -> vector<8x8xf32>
    %70 = vector.broadcast %31 : f32 to vector<8x8xf32>
    %71 = arith.mulf %69, %70 : vector<8x8xf32>
    %72 = arith.addf %71, %37 : vector<8x8xf32>
    %cst_24 = arith.constant dense<0xFF800000> : vector<8xf32>
    %73 = vector.multi_reduction <maximumf>, %72, %cst_24 [1] : vector<8x8xf32> to vector<8xf32>
    %74 = vector.shape_cast %73 : vector<8xf32> to vector<8x1xf32>
    %75 = vector.broadcast %74 : vector<8x1xf32> to vector<8x8xf32>
    %76 = arith.subf %72, %75 : vector<8x8xf32>
    %77 = math.exp %76 : vector<8x8xf32>
    %cst_25 = arith.constant dense<0.000000e+00> : vector<8xf32>
    %78 = vector.multi_reduction <add>, %77, %cst_25 [1] : vector<8x8xf32> to vector<8xf32>
    %79 = vector.shape_cast %78 : vector<8xf32> to vector<8x1xf32>
    %80 = tpu.reciprocal %79 {approx = true} : vector<8x1xf32> -> vector<8x1xf32>
    %81 = vector.broadcast %80 : vector<8x1xf32> to vector<8x8xf32>
    %82 = arith.mulf %77, %81 : vector<8x8xf32>
    %83 = arith.truncf %82 : vector<8x8xf32> to vector<8x8xbf16>
    %cst_26 = arith.constant dense<0.000000e+00> : vector<8x8xf32>
    %84 = tpu.matmul %83, %67, %cst_26 {dimension_numbers = #tpu.dot_dimension_numbers<[1], [0], [0], [1], [0, 0, 1, 1], [], []>} : vector<8x8xbf16>, vector<8x8xbf16>, vector<8x8xf32> -> vector<8x8xf32>
    %c0_27 = arith.constant 0 : index
    %c8 = arith.constant 8 : index
    %85 = vector.load %arg14[%c0_27, %c8] : memref<8x32xf32, #tpu.memory_space<vmem>>, vector<8x8xf32>
    tpu.vector_store %arg14[%c0_27, %c8], %84 {strides = array<i32>} : memref<8x32xf32, #tpu.memory_space<vmem>>, vector<8x8xf32>,
    %86 = vector.extract_strided_slice %30 {offsets = [0, 16], sizes = [8, 8], strides = [1, 1]} : vector<8x96xf32> to vector<8x8xf32>
    %87 = arith.truncf %86 : vector<8x8xf32> to vector<8x8xbf16>
    %88 = vector.extract_strided_slice %30 {offsets = [0, 48], sizes = [8, 8], strides = [1, 1]} : vector<8x96xf32> to vector<8x8xf32>
    %89 = arith.truncf %88 : vector<8x8xf32> to vector<8x8xbf16>
    %90 = vector.extract_strided_slice %30 {offsets = [0, 80], sizes = [8, 8], strides = [1, 1]} : vector<8x96xf32> to vector<8x8xf32>
    %91 = arith.truncf %90 : vector<8x8xf32> to vector<8x8xbf16>
    %92 = tpu.transpose %89, [1, 0] : vector<8x8xbf16> -> vector<8x8xbf16>
    %cst_28 = arith.constant dense<0.000000e+00> : vector<8x8xf32>
    %93 = tpu.matmul %87, %92, %cst_28 {dimension_numbers = #tpu.dot_dimension_numbers<[1], [0], [0], [1], [0, 0, 1, 1], [], []>} : vector<8x8xbf16>, vector<8x8xbf16>, vector<8x8xf32> -> vector<8x8xf32>
    %94 = vector.broadcast %31 : f32 to vector<8x8xf32>
    %95 = arith.mulf %93, %94 : vector<8x8xf32>
    %96 = arith.addf %95, %37 : vector<8x8xf32>
    %cst_29 = arith.constant dense<0xFF800000> : vector<8xf32>
    %97 = vector.multi_reduction <maximumf>, %96, %cst_29 [1] : vector<8x8xf32> to vector<8xf32>
    %98 = vector.shape_cast %97 : vector<8xf32> to vector<8x1xf32>
    %99 = vector.broadcast %98 : vector<8x1xf32> to vector<8x8xf32>
    %100 = arith.subf %96, %99 : vector<8x8xf32>
    %101 = math.exp %100 : vector<8x8xf32>
    %cst_30 = arith.constant dense<0.000000e+00> : vector<8xf32>
    %102 = vector.multi_reduction <add>, %101, %cst_30 [1] : vector<8x8xf32> to vector<8xf32>
    %103 = vector.shape_cast %102 : vector<8xf32> to vector<8x1xf32>
    %104 = tpu.reciprocal %103 {approx = true} : vector<8x1xf32> -> vector<8x1xf32>
    %105 = vector.broadcast %104 : vector<8x1xf32> to vector<8x8xf32>
    %106 = arith.mulf %101, %105 : vector<8x8xf32>
    %107 = arith.truncf %106 : vector<8x8xf32> to vector<8x8xbf16>
    %cst_31 = arith.constant dense<0.000000e+00> : vector<8x8xf32>
    %108 = tpu.matmul %107, %91, %cst_31 {dimension_numbers = #tpu.dot_dimension_numbers<[1], [0], [0], [1], [0, 0, 1, 1], [], []>} : vector<8x8xbf16>, vector<8x8xbf16>, vector<8x8xf32> -> vector<8x8xf32>
    %c0_32 = arith.constant 0 : index
    %c16 = arith.constant 16 : index
    %109 = vector.load %arg14[%c0_32, %c16] : memref<8x32xf32, #tpu.memory_space<vmem>>, vector<8x8xf32>
    tpu.vector_store %arg14[%c0_32, %c16], %108 {strides = array<i32>} : memref<8x32xf32, #tpu.memory_space<vmem>>, vector<8x8xf32>,
    %110 = vector.extract_strided_slice %30 {offsets = [0, 24], sizes = [8, 8], strides = [1, 1]} : vector<8x96xf32> to vector<8x8xf32>
    %111 = arith.truncf %110 : vector<8x8xf32> to vector<8x8xbf16>
    %112 = vector.extract_strided_slice %30 {offsets = [0, 56], sizes = [8, 8], strides = [1, 1]} : vector<8x96xf32> to vector<8x8xf32>
    %113 = arith.truncf %112 : vector<8x8xf32> to vector<8x8xbf16>
    %114 = vector.extract_strided_slice %30 {offsets = [0, 88], sizes = [8, 8], strides = [1, 1]} : vector<8x96xf32> to vector<8x8xf32>
    %115 = arith.truncf %114 : vector<8x8xf32> to vector<8x8xbf16>
    %116 = tpu.transpose %113, [1, 0] : vector<8x8xbf16> -> vector<8x8xbf16>
    %cst_33 = arith.constant dense<0.000000e+00> : vector<8x8xf32>
    %117 = tpu.matmul %111, %116, %cst_33 {dimension_numbers = #tpu.dot_dimension_numbers<[1], [0], [0], [1], [0, 0, 1, 1], [], []>} : vector<8x8xbf16>, vector<8x8xbf16>, vector<8x8xf32> -> vector<8x8xf32>
    %118 = vector.broadcast %31 : f32 to vector<8x8xf32>
    %119 = arith.mulf %117, %118 : vector<8x8xf32>
    %120 = arith.addf %119, %37 : vector<8x8xf32>
    %cst_34 = arith.constant dense<0xFF800000> : vector<8xf32>
    %121 = vector.multi_reduction <maximumf>, %120, %cst_34 [1] : vector<8x8xf32> to vector<8xf32>
    %122 = vector.shape_cast %121 : vector<8xf32> to vector<8x1xf32>
    %123 = vector.broadcast %122 : vector<8x1xf32> to vector<8x8xf32>
    %124 = arith.subf %120, %123 : vector<8x8xf32>
    %125 = math.exp %124 : vector<8x8xf32>
    %cst_35 = arith.constant dense<0.000000e+00> : vector<8xf32>
    %126 = vector.multi_reduction <add>, %125, %cst_35 [1] : vector<8x8xf32> to vector<8xf32>
    %127 = vector.shape_cast %126 : vector<8xf32> to vector<8x1xf32>
    %128 = tpu.reciprocal %127 {approx = true} : vector<8x1xf32> -> vector<8x1xf32>
    %129 = vector.broadcast %128 : vector<8x1xf32> to vector<8x8xf32>
    %130 = arith.mulf %125, %129 : vector<8x8xf32>
    %131 = arith.truncf %130 : vector<8x8xf32> to vector<8x8xbf16>
    %cst_36 = arith.constant dense<0.000000e+00> : vector<8x8xf32>
    %132 = tpu.matmul %131, %115, %cst_36 {dimension_numbers = #tpu.dot_dimension_numbers<[1], [0], [0], [1], [0, 0, 1, 1], [], []>} : vector<8x8xbf16>, vector<8x8xbf16>, vector<8x8xf32> -> vector<8x8xf32>
    %c0_37 = arith.constant 0 : index
    %c24 = arith.constant 24 : index
    %133 = vector.load %arg14[%c0_37, %c24] : memref<8x32xf32, #tpu.memory_space<vmem>>, vector<8x8xf32>
    tpu.vector_store %arg14[%c0_37, %c24], %132 {strides = array<i32>} : memref<8x32xf32, #tpu.memory_space<vmem>>, vector<8x8xf32>,
    %c0_38 = arith.constant 0 : index
    %c0_39 = arith.constant 0 : index
    %134 = vector.load %arg14[%c0_38, %c0_39] : memref<8x32xf32, #tpu.memory_space<vmem>>, vector<8x32xf32>
    %135 = arith.truncf %134 : vector<8x32xf32> to vector<8x32xbf16>
    %c0_40 = arith.constant 0 : index
    %c0_41 = arith.constant 0 : index
    %136 = vector.load %arg5[%c0_40, %c0_41] : memref<32x32xbf16, #tpu.memory_space<vmem>>, vector<32x32xbf16>
    %cst_42 = arith.constant dense<0.000000e+00> : vector<8x32xf32>
    %137 = tpu.matmul %135, %136, %cst_42 {dimension_numbers = #tpu.dot_dimension_numbers<[1], [0], [0], [1], [0, 0, 1, 1], [], []>} : vector<8x32xbf16>, vector<32x32xbf16>, vector<8x32xf32> -> vector<8x32xf32>
    %c0_43 = arith.constant 0 : index
    %c0_44 = arith.constant 0 : index
    %138 = vector.load %arg6[%c0_43, %c0_44] : memref<1x32xf32, #tpu.memory_space<vmem>>, vector<1x32xf32>
    %139 = vector.shape_cast %138 : vector<1x32xf32> to vector<32xf32>
    %140 = vector.shape_cast %139 : vector<32xf32> to vector<1x32xf32>
    %141 = vector.broadcast %140 : vector<1x32xf32> to vector<8x32xf32>
    %142 = arith.addf %137, %141 : vector<8x32xf32>
    %143 = arith.addf %1, %142 : vector<8x32xf32>
    %cst_45 = arith.constant dense<0.000000e+00> : vector<8xf32>
    %144 = vector.multi_reduction <add>, %143, %cst_45 [1] : vector<8x32xf32> to vector<8xf32>
    %145 = vector.shape_cast %144 : vector<8xf32> to vector<8x1xf32>
    %cst_46 = arith.constant 3.200000e+01 : f32
    %146 = vector.broadcast %cst_46 : f32 to vector<8x1xf32>
    %147 = arith.divf %145, %146 : vector<8x1xf32>
    %148 = vector.broadcast %147 : vector<8x1xf32> to vector<8x32xf32>
    %149 = arith.subf %143, %148 : vector<8x32xf32>
    %150 = arith.mulf %149, %149 : vector<8x32xf32>
    %cst_47 = arith.constant dense<0.000000e+00> : vector<8xf32>
    %151 = vector.multi_reduction <add>, %150, %cst_47 [1] : vector<8x32xf32> to vector<8xf32>
    %152 = vector.shape_cast %151 : vector<8xf32> to vector<8x1xf32>
    %cst_48 = arith.constant 3.200000e+01 : f32
    %153 = vector.broadcast %cst_48 : f32 to vector<8x1xf32>
    %154 = arith.divf %152, %153 : vector<8x1xf32>
    %cst_49 = arith.constant 9.99999974E-6 : f32
    %155 = vector.broadcast %cst_49 : f32 to vector<8x1xf32>
    %156 = arith.addf %154, %155 : vector<8x1xf32>
    %157 = math.rsqrt %156 : vector<8x1xf32>
    %158 = vector.broadcast %157 : vector<8x1xf32> to vector<8x32xf32>
    %159 = arith.mulf %149, %158 : vector<8x32xf32>
    %c0_50 = arith.constant 0 : index
    %c0_51 = arith.constant 0 : index
    %160 = vector.load %arg7[%c0_50, %c0_51] : memref<1x32xf32, #tpu.memory_space<vmem>>, vector<1x32xf32>
    %161 = vector.shape_cast %160 : vector<1x32xf32> to vector<32xf32>
    %162 = vector.shape_cast %161 : vector<32xf32> to vector<1x32xf32>
    %163 = vector.broadcast %162 : vector<1x32xf32> to vector<8x32xf32>
    %164 = arith.mulf %159, %163 : vector<8x32xf32>
    %c0_52 = arith.constant 0 : index
    %c0_53 = arith.constant 0 : index
    %165 = vector.load %arg8[%c0_52, %c0_53] : memref<1x32xf32, #tpu.memory_space<vmem>>, vector<1x32xf32>
    %166 = vector.shape_cast %165 : vector<1x32xf32> to vector<32xf32>
    %167 = vector.shape_cast %166 : vector<32xf32> to vector<1x32xf32>
    %168 = vector.broadcast %167 : vector<1x32xf32> to vector<8x32xf32>
    %169 = arith.addf %164, %168 : vector<8x32xf32>
    %170 = arith.truncf %169 : vector<8x32xf32> to vector<8x32xbf16>
    %c0_54 = arith.constant 0 : index
    %c0_55 = arith.constant 0 : index
    %171 = vector.load %arg9[%c0_54, %c0_55] : memref<32x128xbf16, #tpu.memory_space<vmem>>, vector<32x128xbf16>
    %cst_56 = arith.constant dense<0.000000e+00> : vector<8x128xf32>
    %172 = tpu.matmul %170, %171, %cst_56 {dimension_numbers = #tpu.dot_dimension_numbers<[1], [0], [0], [1], [0, 0, 1, 1], [], []>} : vector<8x32xbf16>, vector<32x128xbf16>, vector<8x128xf32> -> vector<8x128xf32>
    %c0_57 = arith.constant 0 : index
    %c0_58 = arith.constant 0 : index
    %173 = vector.load %arg10[%c0_57, %c0_58] : memref<1x128xf32, #tpu.memory_space<vmem>>, vector<1x128xf32>
    %174 = vector.shape_cast %173 : vector<1x128xf32> to vector<128xf32>
    %175 = vector.shape_cast %174 : vector<128xf32> to vector<1x128xf32>
    %176 = vector.broadcast %175 : vector<1x128xf32> to vector<8x128xf32>
    %177 = arith.addf %172, %176 : vector<8x128xf32>
    %cst_59 = arith.constant 0.000000e+00 : f32
    %178 = vector.broadcast %cst_59 : f32 to vector<8x128xf32>
    %179 = arith.maximumf %177, %178 : vector<8x128xf32>
    %180 = arith.truncf %179 : vector<8x128xf32> to vector<8x128xbf16>
    %c0_60 = arith.constant 0 : index
    %c0_61 = arith.constant 0 : index
    %181 = vector.load %arg11[%c0_60, %c0_61] : memref<128x32xbf16, #tpu.memory_space<vmem>>, vector<128x32xbf16>
    %cst_62 = arith.constant dense<0.000000e+00> : vector<8x32xf32>
    %182 = tpu.matmul %180, %181, %cst_62 {dimension_numbers = #tpu.dot_dimension_numbers<[1], [0], [0], [1], [0, 0, 1, 1], [], []>} : vector<8x128xbf16>, vector<128x32xbf16>, vector<8x32xf32> -> vector<8x32xf32>
    %c0_63 = arith.constant 0 : index
    %c0_64 = arith.constant 0 : index
    %183 = vector.load %arg12[%c0_63, %c0_64] : memref<1x32xf32, #tpu.memory_space<vmem>>, vector<1x32xf32>
    %184 = vector.shape_cast %183 : vector<1x32xf32> to vector<32xf32>
    %185 = vector.shape_cast %184 : vector<32xf32> to vector<1x32xf32>
    %186 = vector.broadcast %185 : vector<1x32xf32> to vector<8x32xf32>
    %187 = arith.addf %182, %186 : vector<8x32xf32>
    %188 = arith.addf %143, %187 : vector<8x32xf32>
    %189 = vector.shape_cast %188 : vector<8x32xf32> to vector<1x8x32xf32>
    %c0_65 = arith.constant 0 : index
    %c0_66 = arith.constant 0 : index
    %c0_67 = arith.constant 0 : index
    %190 = vector.load %arg13[%c0_65, %c0_66, %c0_67] : memref<1x8x32xf32, #tpu.memory_space<vmem>>, vector<1x8x32xf32>
    tpu.vector_store %arg13[%c0_65, %c0_66, %c0_67], %189 {strides = array<i32>} : memref<1x8x32xf32, #tpu.memory_space<vmem>>, vector<1x8x32xf32>,
    return
  }
  func.func @transform_0(%arg0: i32) -> (i32, i32, i32) {
    %c0_i32 = arith.constant 0 : i32
    %c0_i32_0 = arith.constant 0 : i32
    %c0_i32_1 = arith.constant 0 : i32
    return %arg0, %c0_i32, %c0_i32_0 : i32, i32, i32
  }
  func.func @transform_1(%arg0: i32) -> (i32, i32) {
    %c0_i32 = arith.constant 0 : i32
    %c0_i32_0 = arith.constant 0 : i32
    %c0_i32_1 = arith.constant 0 : i32
    return %c0_i32, %c0_i32_0 : i32, i32
  }
  func.func @transform_2(%arg0: i32) -> (i32, i32) {
    %c0_i32 = arith.constant 0 : i32
    %c0_i32_0 = arith.constant 0 : i32
    %c0_i32_1 = arith.constant 0 : i32
    return %c0_i32, %c0_i32_0 : i32, i32
  }
  func.func @transform_3(%arg0: i32) -> (i32, i32) {
    %c0_i32 = arith.constant 0 : i32
    %c0_i32_0 = arith.constant 0 : i32
    %c0_i32_1 = arith.constant 0 : i32
    return %c0_i32, %c0_i32_0 : i32, i32
  }
  func.func @transform_4(%arg0: i32) -> (i32, i32) {
    %c0_i32 = arith.constant 0 : i32
    %c0_i32_0 = arith.constant 0 : i32
    %c0_i32_1 = arith.constant 0 : i32
    return %c0_i32, %c0_i32_0 : i32, i32
  }
  func.func @transform_5(%arg0: i32) -> (i32, i32) {
    %c0_i32 = arith.constant 0 : i32
    %c0_i32_0 = arith.constant 0 : i32
    %c0_i32_1 = arith.constant 0 : i32
    return %c0_i32, %c0_i32_0 : i32, i32
  }
  func.func @transform_6(%arg0: i32) -> (i32, i32) {
    %c0_i32 = arith.constant 0 : i32
    %c0_i32_0 = arith.constant 0 : i32
    %c0_i32_1 = arith.constant 0 : i32
    return %c0_i32, %c0_i32_0 : i32, i32
  }
  func.func @transform_7(%arg0: i32) -> (i32, i32) {
    %c0_i32 = arith.constant 0 : i32
    %c0_i32_0 = arith.constant 0 : i32
    %c0_i32_1 = arith.constant 0 : i32
    return %c0_i32, %c0_i32_0 : i32, i32
  }
  func.func @transform_8(%arg0: i32) -> (i32, i32) {
    %c0_i32 = arith.constant 0 : i32
    %c0_i32_0 = arith.constant 0 : i32
    %c0_i32_1 = arith.constant 0 : i32
    return %c0_i32, %c0_i32_0 : i32, i32
  }
  func.func @transform_9(%arg0: i32) -> (i32, i32) {
    %c0_i32 = arith.constant 0 : i32
    %c0_i32_0 = arith.constant 0 : i32
    %c0_i32_1 = arith.constant 0 : i32
    return %c0_i32, %c0_i32_0 : i32, i32
  }
  func.func @transform_10(%arg0: i32) -> (i32, i32) {
    %c0_i32 = arith.constant 0 : i32
    %c0_i32_0 = arith.constant 0 : i32
    %c0_i32_1 = arith.constant 0 : i32
    return %c0_i32, %c0_i32_0 : i32, i32
  }
  func.func @transform_11(%arg0: i32) -> (i32, i32) {
    %c0_i32 = arith.constant 0 : i32
    %c0_i32_0 = arith.constant 0 : i32
    %c0_i32_1 = arith.constant 0 : i32
    return %c0_i32, %c0_i32_0 : i32, i32
  }
  func.func @transform_12(%arg0: i32) -> (i32, i32, i32) {
    %c0_i32 = arith.constant 0 : i32
    %c0_i32_0 = arith.constant 0 : i32
    %c0_i32_1 = arith.constant 0 : i32
    return %arg0, %c0_i32, %c0_i32_0 : i32, i32, i32
  }
}

</mosaic_0001>

<bundles_post_ra>
// kernel: tpu_custom_call.1
= control target key start
LH: loop header
LB: loop body
LE: loop exit
PB: predicated region body
PF: predicated region fallthrough
CT: control target
= control target key end

     0   :  { %s1542_s0 = inlined_call_operand.vmem [shape: f32[2,8,32], index: 0, kind: input, shape index: {}]   ;;  %s1543_s1 = inlined_call_operand.vmem [shape: f32[1,32], index: 1, kind: input, shape index: {}]   ;;  %s1544_s2 = inlined_call_operand.vmem [shape: f32[1,32], index: 2, kind: input, shape index: {}]   ;;  %s1545_s3 = inlined_call_operand.vmem [shape: bf16[32,96], index: 3, kind: input, shape index: {}]   ;;  %s1546_s4 = inlined_call_operand.vmem [shape: bf16[32,32], index: 4, kind: input, shape index: {}]   ;;  %s1547_s5 = inlined_call_operand.vmem [shape: f32[1,32], index: 5, kind: input, shape index: {}]   ;;  %s1548_s6 = inlined_call_operand.vmem [shape: f32[1,32], index: 6, kind: input, shape index: {}]   ;;  %s1549_s7 = inlined_call_operand.vmem [shape: f32[1,32], index: 7, kind: input, shape index: {}]   ;;  %s1550_s8 = inlined_call_operand.vmem [shape: bf16[32,128], index: 8, kind: input, shape index: {}]   ;;  %s1551_s9 = inlined_call_operand.vmem [shape: f32[1,128], index: 9, kind: input, shape index: {}]   ;;  %s1552_s10 = inlined_call_operand.vmem [shape: bf16[128,32], index: 10, kind: input, shape index: {}]   ;;  %s1553_s11 = inlined_call_operand.vmem [shape: f32[1,32], index: 11, kind: input, shape index: {}]   ;;  %s1554_s12 = inlined_call_operand.hbm [shape: f32[2,8,32], index: 12, kind: output, shape index: {}]  }
   0x1   :  { %1555 = sst [smem:[#allocation6_spill]] %s1542_s0 }
   0x2   :  { %1556 = sst [smem:[#allocation7_spill]] %s1543_s1 }
   0x3   :  { %1557 = sst [smem:[#allocation8_spill]] %s1544_s2 }
   0x4   :  { %17 = vsyncpa [#allocation4], 0 }
   0x5   :  { %19 = vsyncpa [#allocation4 + $0x1], 0  ;;  %s1331_s21 = smov 0   ;;  %s1333_s22 = smov 0  }
   0x6   :  { %s1335_s23 = smov 0   ;;  %s1337_s24 = smov 0  }
   0x7 LB: > { %s1352_s25 = sadd.s32 4294967295, %s1248_s24   ;;  %s1011_s26 = sadd.s32 4294967294, %s1248_s24   ;;  %s1248_s24 = sphi %s1337_s24, %s1566_s24   ;;  %s1244_s23 = sphi %s1335_s23, %s1565_s23   ;;  %s1240_s22 = sphi %s1333_s22, %s1564_s22   ;;  %s1236_s21 = sphi %s1331_s21, %s1563_s21  }
   0x8   : > { %s1356_s27 = sadd.s32 1, %s1248_s24   ;;  %s289_s28 = sadd.s32 1, %s1244_s23 }
   0x9   : > { %s286_s29 = ssub.s32 %s1248_s24, %s1356_s27  ;;  %p299_p0 = scmp.ne.s32.totalorder %s1244_s23, %s1240_s22 }
   0xa   : > { %p287_p1 = scmp.eq.s32.totalorder %s286_s29, 0  ;;  %p300_p2 = scmp.eq.s32.totalorder %s1352_s25, 1 }
   0xb   : > { %p305_p3 = scmp.ne.s32.totalorder %s1240_s22, %s1236_s21  ;;  %p306_p4 = scmp.eq.s32.totalorder %s1011_s26, 1 }
   0xc   : > { %s1367_s30 = scalar_select %p287_p1, %s1244_s23, %s289_s28  }
   0xd   : > { %p1369_p5 = por %p300_p2, %p299_p0  ;;  %p1373_p6 = por %p306_p4, %p305_p3 }
   0xe   : > { %p1014_p7 = scmp.ge.s32.totalorder %s1248_s24, 1  ;;  %p364_p8 = scmp.lt.s32.totalorder %s1248_s24, 3 }
  0x10   : > { %p365_p9 = pnand %p1014_p7, %p364_p8 }
  0x11   : > { %p405_p10 = scmp.lt.s32.totalorder (!%p365_p9), %s1352_s25, 1  ;;  %s1560_s0 = sld [smem:[#allocation6_spill]] (!%p365_p9) }
  0x12   : > { %368 = sbr.rel (%p365_p9) target bundleno = 2316 (0x90c), region = 68  ;;  %s1561_s1 = sld [smem:[#allocation7_spill]] (!%p365_p9) }
  0x13   : > { %s1562_s2 = sld [smem:[#allocation8_spill]] (!%p365_p9)  ;;  %s1252_s20 = smov (!%p365_p9), 64  }
  0x14   : > { %s1253_s26 = smov (!%p365_p9), 96   ;;  %s1254_s28 = smov (!%p365_p9), 72  }
  0x15   : > { %s1255_s29 = smov (!%p365_p9), 80   ;;  %s1259_s17 = smov (!%p365_p9), 112  }
  0x16   : > { %s1260_s18 = smov (!%p365_p9), 40  }
  0x17   : > { %s406_s15 = scalar_select %p405_p10, %s1352_s25, 1  ;;  %vm411_vm0 = vcmask 261120   ;;  %v1250_v2 = vmov 32.0   ;;  %v1089_v14 = vld [vmem:[%s1545_s3 + $0x8] sm:$0xff]  ;;  %v1088_v15 = vld [vmem:[%s1545_s3] sm:$0xff]  ;;  %vm533_vm5 = vcmask 1043456   ;;  %v484_v45 = vlaneseq }
  0x18   : > { %1164 = vrcp.f32 %v1250_v2  ;;  %477 = vmatpush.bf16.msra.mxu0 %v1089_v14  ;;  %v1157_v25 = vld [vmem:[%s1561_s1] ss:$0 sm:$0xff]  ;;  %vm494_vm6 = vcmask 64512   ;;  %v1256_v49 = vmov -1e+30   ;;  %vm613_vm8 = vcmask 130112  }
  0x19   : > { %s1016_s16 = sshll.u32 %s406_s15, 3  ;;  %v1158_v28 = vld [vmem:[%s1562_s2] ss:$0 sm:$0xff]  ;;  %v485_v46 = vshrl.u32 %v484_v45, 7  ;;  %v487_v47 = vand.u32 127, %v484_v45  ;;  %s1257_s15 = smov 120  }
  0x1a   : > { %s408_s19 = scalar_lea.vmem %s1560_s0, %s1016_s16  ;;  %s1258_s16 = smov 104   ;;  %vm677_vm9 = vcmask 195712   ;;  %vm741_vm10 = vcmask 261312  }
  0x1b   : > { %v1384_v0 = vld [vmem:[%s408_s19] sm:$0xff]  ;;  %s1251_s19 = smov 88   ;;  %vm488_vm7 = vcmp.ge.s32.totalorder %v485_v46, %v487_v47 }
  0x1c   : > { %v412_v1 = vsel %vm411_vm0, %v1384_v0, 0.0  ;;  %478 = vmatpush.bf16.msra.mxu0 %v1088_v15  ;;  %v489_v50 = vsel %vm488_vm7, 0.0, %v1256_v49 }
  0x1d   : > { %413 = vadd.xlane.f32.xlu0 %v412_v1 }
  0x1e   : > { %v1165_v3 = vpop.eup %1164 }
  0x1f   : > { %v416_v4 = vmul.f32 32.0, %v1165_v3  ;;  %vm420_vm1 = vweird.f32 %v1165_v3 }
  0x21   : > { %v417_v5 = vsub.f32 1.0, %v416_v4 }
  0x23   : > { %v418_v6 = vmul.f32 %v1165_v3, %v417_v5 }
  0x25   : > { %v419_v7 = vadd.f32 %v1165_v3, %v418_v6 }
  0x27   : > { %v1388_v8 = vsel %vm420_vm1, %v1165_v3, %v419_v7 }
  0x90   : > { %v414_v9 = vpop.xlane.xlu0 %413 }
  0x91   : > { %v422_v10 = vmul.f32 %v1388_v8, %v414_v9 }
  0x93   : > { %v423_v11 = vsub.f32 %v1384_v0, %v422_v10 }
  0x95   : > { %v424_v12 = vmul.f32 %v423_v11, %v423_v11 }
  0x97   : > { %v425_v13 = vsel %vm411_vm0, %v424_v12, 0.0 }
  0x98   : > { %426 = vadd.xlane.f32.xlu0 %v425_v13 }
 0x10b   : > { %v427_v16 = vpop.xlane.xlu0 %426 }
 0x10c   : > { %v428_v17 = vmul.f32 %v427_v16, %v1388_v8 }
 0x10e   : > { %v429_v18 = vadd.f32 1e-05, %v428_v17 }
 0x110   : > { %1166 = vrsqrt.f32 %v429_v18  ;;  %vm436_vm3 = vweird.f32 %v429_v18 }
 0x116   : > { %v1167_v19 = vpop.eup %1166 }
 0x117   : > { %v431_v20 = vmul.f32 %v1167_v19, %v429_v18  ;;  %vm437_vm2 = vweird.f32 %v1167_v19 }
 0x118   : > { %vm438_vm4 = vmor %vm436_vm3, %vm437_vm2 }
 0x119   : > { %v432_v21 = vmul.f32 %v1167_v19, %v431_v20 }
 0x11b   : > { %v433_v22 = vmul.f32 0.5, %v432_v21 }
 0x11d   : > { %v434_v23 = vsub.f32 1.5, %v433_v22 }
 0x11f   : > { %v435_v24 = vmul.f32 %v1167_v19, %v434_v23 }
 0x121   : > { %v439_v26 = vsel %vm438_vm4, %v1167_v19, %v435_v24 }
 0x122   : > { %v440_v27 = vmul.f32 %v439_v26, %v423_v11 }
 0x124   : > { %v445_v29 = vmul.f32 %v1157_v25, %v440_v27 }
 0x126   : > { %v450_v30 = vadd.f32 %v1158_v28, %v445_v29 }
 0x128   : > { %v451_v31 = vpack.c.bf16 %v450_v30, %v450_v30 }
 0x12a   : > { %1025 = vmatmul.msk.bf16.vlgmr.msra.gmra.mxu0 %vm411_vm0, %v451_v31 }
 0x1a7   : > { %v480_v32 = vpop.f32.mrf.mxu0 }
 0x1a8   : > { %v1407_v33 = vpack.c.bf16 %v480_v32, %v480_v32 }
 0x1aa   : > { %553 = vrot.lane.b32.xlu0 %v1407_v33, %s1251_s19  ;;  %528 = vrot.lane.b32.xlu2 %v1407_v33, %s1252_s20  ;;  %s1261_s19 = smov 48   ;;  %s1262_s20 = smov 56  }
 0x1ab   : > { %492 = vrot.lane.b32.xlu1 %v1407_v33, %s1253_s26  ;;  %s1263_s26 = smov 16  }
 0x1af   : > { %v482_v34 = vpop.f32.mrf.mxu0 }
 0x1b2   : > { %681 = vrot.lane.b32.xlu0 %v1407_v33, %s1254_s28  ;;  %s1264_s28 = smov 8  }
 0x1ba   : > { %617 = vrot.lane.b32.xlu0 %v1407_v33, %s1255_s29  ;;  %s1265_s29 = smov 24  }
 0x204   : > { %v529_v35 = vpop.permute.xlu2 %528 }
 0x205   : > { %v535_v36 = vsel %vm533_vm5, %v529_v35, 0 }
 0x206   : > { %544 = vmatpush.bf16.msra.mxu2 %v535_v36 }
 0x21c   : > { %v554_v37 = vpop.permute.xlu0 %553 }
 0x21d   : > { %v493_v38 = vpop.permute.xlu1 %492  ;;  %v559_v39 = vsel %vm494_vm6, %v554_v37, 0 }
 0x21e   : > { %v499_v40 = vsel %vm494_vm6, %v493_v38, 0  ;;  %568 = vmatpush.bf16.xpose.msrb.mxu2 %v559_v39 }
 0x21f   : > { %508 = vmatpush.bf16.xpose.msra.mxu1 %v499_v40 }
 0x224   : > { %v682_v41 = vpop.permute.xlu0 %681 }
 0x225   : > { %v687_v42 = vsel %vm494_vm6, %v682_v41, 0 }
 0x226   : > { %1026 = vmatmul.msk.bf16.vlgmr.msra.gmra.mxu1 %vm494_vm6, %v1407_v33  ;;  %696 = vmatpush.bf16.xpose.msra.mxu3 %v687_v42 }
 0x22c   : > { %v618_v43 = vpop.permute.xlu0 %617 }
 0x22d   : > { %v623_v44 = vsel %vm494_vm6, %v618_v43, 0 }
 0x22e   : > { %632 = vmatpush.bf16.xpose.msrb.mxu0 %v623_v44 }
 0x2a3   : > { %v510_v48 = vpop.f32.mrf.mxu1 }
 0x2a4   : > { %v514_v51 = vmul.f32 0.17677669, %v510_v48 }
 0x2a6   : > { %v515_v52 = vadd.f32 %v514_v51, %v489_v50 }
 0x2a8   : > { %v516_v53 = vsel %vm494_vm6, %v515_v52, -inf }
 0x2a9   : > { %517 = vmax.xlane.f32.xlu1 %v516_v53 }
 0x2ab   : > { %v512_v54 = vpop.f32.mrf.mxu1 }
 0x31c   : > { %v518_v55 = vpop.xlane.xlu1 %517 }
 0x31d   : > { %v519_v56 = vsub.f32 %v515_v52, %v518_v55 }
 0x31f   : > { %v520_v57 = vmul.f32 1.442695, %v519_v56 }
 0x321   : > { %1168 = vpow2.f32 %v520_v57 }
 0x327   : > { %v1169_v58 = vpop.eup %1168 }
 0x328   : > { %v522_v59 = vsel %vm494_vm6, %v1169_v58, 0.0 }
 0x329   : > { %523 = vadd.xlane.f32.xlu2 %v522_v59 }
 0x341   : > { %551 = vrot.lane.b32.xlu2 %v1407_v33, %s1257_s15 }
 0x349   : > { %679 = vrot.lane.b32.xlu2 %v1407_v33, %s1258_s16 }
 0x351   : > { %615 = vrot.lane.b32.xlu2 %v1407_v33, %s1259_s17 }
 0x39c   : > { %v524_v60 = vpop.xlane.xlu2 %523 }
 0x39d   : > { %1170 = vrcp.f32 %v524_v60 }
 0x3a3   : > { %v1171_v61 = vpop.eup %1170 }
 0x3a4   : > { %v552_v62 = vpop.permute.xlu2 %551  ;;  %v526_v63 = vmul.f32 %v1171_v61, %v1169_v58  ;;  %v1091_v61 = vld [vmem:[%s1546_s4 + $0x8] sm:$0xff] }
 0x3a5   : > { %774 = vmatpush.bf16.msra.mxu0 %v1091_v61 }
 0x3a6   : > { %v527_v1 = vpack.c.bf16 %v526_v63, %v526_v63 }
 0x3a8   : > { %1027 = vmatmul.msk.bf16.vlgmr.msra.gmra.mxu2 %vm494_vm6, %v527_v1  ;;  %v1090_v1 = vld [vmem:[%s1546_s4] sm:$0xff] }
 0x3a9   : > { %775 = vmatpush.bf16.msra.mxu0 %v1090_v1 }
 0x3ac   : > { %v680_v2 = vpop.permute.xlu2 %679 }
 0x3ad   : > { %1032 = vmatmul.msk.bf16.vlgmr.msra.gmra.mxu3 %vm494_vm6, %v680_v2 }
 0x3b4   : > { %v616_v3 = vpop.permute.xlu2 %615 }
 0x3b5   : > { %1030 = vmatmul.msk.bf16.vlgmr.msrb.gmra.mxu0 %vm494_vm6, %v616_v3 }
 0x3b8   : > { %1028 = vmatmul.msk.bf16.vlgmr.msrb.gmra.mxu2 %vm494_vm6, %v552_v62 }
 0x42b   : > { %v546_v4 = vpop.f32.mrf.mxu2 }
 0x42c   : > { %550 = vst.msk [vmem:[#allocation2] sm:$0xff] %vm494_vm6, %v546_v4 }
 0x430   : > { %v698_v5 = vpop.f32.mrf.mxu3 }
 0x431   : > { %v702_v6 = vmul.f32 0.17677669, %v698_v5  ;;  %v1159_v5 = vld [vmem:[%s1547_s5] ss:$0 sm:$0xff] }
 0x432   : > { %v634_v7 = vpop.f32.mrf.mxu0 }
 0x433   : > { %v638_v9 = vmul.f32 0.17677669, %v634_v7  ;;  %v548_v10 = vpop.f32.mrf.mxu2  ;;  %v703_v11 = vadd.f32 %v702_v6, %v489_v50 }
 0x435   : > { %v704_v12 = vsel %vm494_vm6, %v703_v11, -inf  ;;  %v639_v13 = vadd.f32 %v638_v9, %v489_v50 }
 0x436   : > { %705 = vmax.xlane.f32.xlu0 %v704_v12 }
 0x437   : > { %v640_v14 = vsel %vm494_vm6, %v639_v13, -inf }
 0x438   : > { %v700_v15 = vpop.f32.mrf.mxu3  ;;  %641 = vmax.xlane.f32.xlu2 %v640_v14 }
 0x43a   : > { %v636_v16 = vpop.f32.mrf.mxu0 }
 0x43b   : > { %v570_v17 = vpop.f32.mrf.mxu2 }
 0x43c   : > { %v574_v18 = vmul.f32 0.17677669, %v570_v17  ;;  %v1093_v17 = vld [vmem:[%s1550_s8 + $0x8] sm:$0xff] }
 0x43e   : > { %v575_v19 = vadd.f32 %v574_v18, %v489_v50  ;;  %v1101_v18 = vld [vmem:[%s1552_s10 + $0x38] sm:$0xff] }
 0x43f   : > { %921 = vmatpush.bf16.msrb.mxu3 %v1101_v18 }
 0x440   : > { %v576_v20 = vsel %vm494_vm6, %v575_v19, -inf }
 0x441   : > { %577 = vmax.xlane.f32.xlu1 %v576_v20 }
 0x443   : > { %v572_v21 = vpop.f32.mrf.mxu2 }
 0x444   : > { %v1100_v21 = vld [vmem:[%s1552_s10 + $0x30] sm:$0xff] }
 0x445   : > { %922 = vmatpush.bf16.msrb.mxu3 %v1100_v21 }
 0x450   : > { %716 = vrot.lane.b32.xlu2 %v1407_v33, %s1260_s18 }
 0x4a9   : > { %v706_v32 = vpop.xlane.xlu0 %705 }
 0x4aa   : > { %v707_v34 = vsub.f32 %v703_v11, %v706_v32  ;;  %v1160_v32 = vld [vmem:[%s1548_s6] ss:$0 sm:$0xff] }
 0x4ab   : > { %v642_v22 = vpop.xlane.xlu2 %641 }
 0x4ac   : > { %v643_v23 = vsub.f32 %v639_v13, %v642_v22  ;;  %v708_v35 = vmul.f32 1.442695, %v707_v34 }
 0x4ae   : > { %v644_v24 = vmul.f32 1.442695, %v643_v23  ;;  %v1099_v23 = vld [vmem:[%s1552_s10 + $0x28] sm:$0xff] }
 0x4af   : > { %923 = vmatpush.bf16.msrb.mxu3 %v1099_v23 }
 0x4b0   : > { %1172 = vpow2.f32 %v644_v24  ;;  %v1098_v24 = vld [vmem:[%s1552_s10 + $0x20] sm:$0xff] }
 0x4b3   : > { %v717_v45 = vpop.permute.xlu2 %716  ;;  %924 = vmatpush.bf16.msrb.mxu3 %v1098_v24 }
 0x4b4   : > { %v578_v25 = vpop.xlane.xlu1 %577  ;;  %v722_v49 = vsel %vm533_vm5, %v717_v45, 0 }
 0x4b5   : > { %v579_v26 = vsub.f32 %v575_v19, %v578_v25 }
 0x4b6   : > { %v1173_v27 = vpop.eup %1172 }
 0x4b7   : > { %v580_v28 = vmul.f32 1.442695, %v579_v26  ;;  %v646_v29 = vsel %vm494_vm6, %v1173_v27, 0.0 }
 0x4b8   : > { %647 = vadd.xlane.f32.xlu0 %v646_v29  ;;  %v1096_v29 = vld [vmem:[%s1552_s10 + $0x10] sm:$0xff] }
 0x4b9   : > { %1174 = vpow2.f32 %v580_v28 }
 0x4ba   : > { %1176 = vpow2.f32 %v708_v35 }
 0x4bf   : > { %v1175_v30 = vpop.eup %1174 }
 0x4c0   : > { %v582_v31 = vsel %vm494_vm6, %v1175_v30, 0.0  ;;  %v1177_v36 = vpop.eup %1176 }
 0x4c1   : > { %583 = vadd.xlane.f32.xlu1 %v582_v31  ;;  %v710_v37 = vsel %vm494_vm6, %v1177_v36, 0.0 }
 0x4cc   : > { %652 = vrot.lane.b32.xlu0 %v1407_v33, %s1261_s19 }
 0x4da   : > { %588 = vrot.lane.b32.xlu1 %v1407_v33, %s1262_s20  ;;  %s402_s20 = sand.u32 1, %s1240_s22  }
 0x504   : > { %711 = vadd.xlane.f32.xlu1 %v710_v37 }
 0x52b   : > { %v648_v38 = vpop.xlane.xlu0 %647 }
 0x52c   : > { %1178 = vrcp.f32 %v648_v38 }
 0x532   : > { %v1179_v39 = vpop.eup %1178 }
 0x533   : > { %v650_v40 = vmul.f32 %v1179_v39, %v1173_v27 }
 0x534   : > { %v584_v42 = vpop.xlane.xlu1 %583 }
 0x535   : > { %v651_v44 = vpack.c.bf16 %v650_v40, %v650_v40  ;;  %1180 = vrcp.f32 %v584_v42  ;;  %v1095_v40 = vld [vmem:[%s1552_s10 + $0x8] sm:$0xff]  ;;  %v1162_v42 = vld [vmem:[%s1551_s9] ss:$0 sm:$0xff] }
 0x53b   : > { %v1181_v33 = vpop.eup %1180 }
 0x53c   : > { %v586_v46 = vmul.f32 %v1181_v33, %v1175_v30 }
 0x53e   : > { %v653_v41 = vpop.permute.xlu0 %652  ;;  %v587_v50 = vpack.c.bf16 %v586_v46, %v586_v46 }
 0x53f   : > { %v658_v43 = vsel %vm533_vm5, %v653_v41, 0  ;;  %v1094_v41 = vld [vmem:[%s1552_s10] sm:$0xff] }
 0x540   : > { %667 = vmatpush.bf16.msrb.mxu1 %v658_v43 }
 0x543   : > { %1031 = vmatmul.msk.bf16.vlgmr.msrb.gmra.mxu1 %vm494_vm6, %v651_v44 }
 0x544   : > { %844 = vmatpush.bf16.msra.mxu1 %v1093_v17 }
 0x54c   : > { %v589_v47 = vpop.permute.xlu1 %588 }
 0x54d   : > { %v594_v48 = vsel %vm533_vm5, %v589_v47, 0  ;;  %v1163_v47 = vld [vmem:[%s1553_s11] ss:$0 sm:$0xff] }
 0x54e   : > { %603 = vmatpush.bf16.msra.mxu2 %v594_v48 }
 0x551   : > { %1029 = vmatmul.msk.bf16.vlgmr.msra.gmra.mxu2 %vm494_vm6, %v587_v50 }
 0x552   : > { %731 = vmatpush.bf16.msrb.mxu2 %v722_v49 }
 0x577   : > { %v712_v51 = vpop.xlane.xlu1 %711 }
 0x578   : > { %1182 = vrcp.f32 %v712_v51 }
 0x57e   : > { %v1183_v52 = vpop.eup %1182 }
 0x57f   : > { %v714_v53 = vmul.f32 %v1183_v52, %v1177_v36  ;;  %v1161_v36 = vld [vmem:[%s1549_s7] ss:$0 sm:$0xff] }
 0x581   : > { %v715_v54 = vpack.c.bf16 %v714_v53, %v714_v53 }
 0x583   : > { %1033 = vmatmul.msk.bf16.vlgmr.msrb.gmra.mxu2 %vm494_vm6, %v715_v54 }
 0x5c0   : > { %v669_v55 = vpop.f32.mrf.mxu1 }
 0x5c1   : > { %674 = vrot.lane.b32.xlu0 %v669_v55, %s1263_s26  ;;  %s1015_s26 = sshll.u32 %s402_s20, 3 }
 0x5c2   : > { %s404_s18 = scalar_lea.vmem [#allocation3], %s1015_s26  ;;  %s1206_s26 = scalar_lea.hbm %s1554_s12, 16 }
 0x5c3   : > { %s949_s19 = sshll.u32 %s404_s18, 4  ;;  %s950_s19 = int_to_ptr.vmem [resolvable:$true] %s949_s19 }
 0x5c8   : > { %v671_v56 = vpop.f32.mrf.mxu1 }
 0x5d4   : > { %v605_v57 = vpop.f32.mrf.mxu2 }
 0x5d5   : > { %610 = vrot.lane.b32.xlu2 %v605_v57, %s1264_s28  ;;  %s1085_s28 = sshll.u32 %s1352_s25, 3  ;;  %s937_s25 = scalar_lea.sflag [#allocation4], %s402_s20 }
 0x5d6   : > { %s947_s0 = scalar_lea.hbm %s1554_s12, %s1085_s28 }
 0x5d7   : > { %s951_s1 = sshll.u32 %s947_s0, 4  ;;  %s952_s1 = int_to_ptr.hbm [resolvable:$true] %s951_s1 }
 0x5d8   : > { %s1200_s2 = sshra.s32 %s952_s1, 4  ;;  %s1201_s2 = int_to_ptr.hbm [resolvable:$true] %s1200_s2 }
 0x5d9   : > { %p1207_p0 = scmp.lt.s32.totalorder %s1201_s2, %s1554_s12 }
 0x5dc   : > { %v607_v58 = vpop.f32.mrf.mxu2 }
 0x606   : > { %v733_v59 = vpop.f32.mrf.mxu2 }
 0x607   : > { %738 = vrot.lane.b32.xlu2 %v733_v59, %s1265_s29  ;;  %s1202_s29 = scalar_lea.hbm %s1201_s2, 8 }
 0x608   : > { %p1203_p11 = scmp.ne.s32.totalorder %s1201_s2, %s1202_s29  ;;  %p1208_p1 = scmp.lt.s32.totalorder %s1206_s26, %s1202_s29 }
 0x60a   : > { %p1204_p12 = pnand %p1203_p11, %p1369_p5  ;;  %p1209_p2 = por %p1208_p1, %p1207_p0 }
 0x60c   : > { %p1205_p13 = pneg %p1204_p12 }
 0x60e   : > { %v735_v60 = vpop.f32.mrf.mxu2  ;;  %p1210_p3 = pnand %p1209_p2, %p1205_p13 }
 0x62f   : > { %v611_v62 = vpop.permute.xlu2 %610 }
 0x630   : > { %614 = vst.msk [vmem:[#allocation2] sm:$0xff] %vm613_vm8, %v611_v62 }
 0x633   : > { %v675_v63 = vpop.permute.xlu0 %674 }
 0x634   : > { %678 = vst.msk [vmem:[#allocation2] sm:$0xff] %vm677_vm9, %v675_v63 }
 0x661   : > { %v739_v2 = vpop.permute.xlu2 %738 }
 0x662   : > { %742 = vst.msk [vmem:[#allocation2] sm:$0xff] %vm741_vm10, %v739_v2 }
 0x669   : > { %v743_v3 = vld [vmem:[#allocation2] sm:$0xff] }
 0x66a   : > { %v744_v4 = vpack.c.bf16 %v743_v3, %v743_v3 }
 0x66c   : > { %1042 = vmatmul.msk.bf16.vlgmr.msra.gmra.mxu0 %vm411_vm0, %v744_v4 }
 0x6e9   : > { %v777_v6 = vpop.f32.mrf.mxu0 }
 0x6ea   : > { %v778_v7 = vadd.f32 %v1159_v5, %v777_v6 }
 0x6ec   : > { %v1457_v9 = vadd.f32 %v778_v7, %v1384_v0  ;;  %v1092_v0 = vld [vmem:[%s1550_s8] sm:$0xff] }
 0x6ed   : > { %845 = vmatpush.bf16.msra.mxu1 %v1092_v0 }
 0x6ee   : > { %v782_v10 = vsel %vm411_vm0, %v1457_v9, 0.0 }
 0x6ef   : > { %783 = vadd.xlane.f32.xlu0 %v782_v10 }
 0x6f1   : > { %v779_v11 = vpop.f32.mrf.mxu0 }
 0x762   : > { %v784_v12 = vpop.xlane.xlu0 %783 }
 0x763   : > { %v785_v13 = vmul.f32 %v784_v12, %v1388_v8 }
 0x765   : > { %v786_v14 = vsub.f32 %v1457_v9, %v785_v13 }
 0x767   : > { %v787_v15 = vmul.f32 %v786_v14, %v786_v14 }
 0x769   : > { %v788_v16 = vsel %vm411_vm0, %v787_v15, 0.0 }
 0x76a   : > { %789 = vadd.xlane.f32.xlu1 %v788_v16 }
 0x7dd   : > { %v790_v19 = vpop.xlane.xlu1 %789 }
 0x7de   : > { %v791_v20 = vmul.f32 %v790_v19, %v1388_v8  ;;  %v1097_v8 = vld [vmem:[%s1552_s10 + $0x18] sm:$0xff] }
 0x7df   : > { %925 = vmatpush.bf16.msrb.mxu3 %v1097_v8 }
 0x7e0   : > { %v792_v22 = vadd.f32 1e-05, %v791_v20 }
 0x7e2   : > { %1184 = vrsqrt.f32 %v792_v22  ;;  %vm799_vm12 = vweird.f32 %v792_v22 }
 0x7e3   : > { %926 = vmatpush.bf16.msrb.mxu3 %v1096_v29 }
 0x7e7   : > { %927 = vmatpush.bf16.msrb.mxu3 %v1095_v40 }
 0x7e8   : > { %v1185_v25 = vpop.eup %1184 }
 0x7e9   : > { %v794_v26 = vmul.f32 %v1185_v25, %v792_v22  ;;  %vm800_vm11 = vweird.f32 %v1185_v25 }
 0x7ea   : > { %vm801_vm13 = vmor %vm799_vm12, %vm800_vm11 }
 0x7eb   : > { %v795_v27 = vmul.f32 %v1185_v25, %v794_v26  ;;  %928 = vmatpush.bf16.msrb.mxu3 %v1094_v41 }
 0x7ed   : > { %v796_v28 = vmul.f32 0.5, %v795_v27 }
 0x7ef   : > { %v797_v30 = vsub.f32 1.5, %v796_v28 }
 0x7f1   : > { %v798_v31 = vmul.f32 %v1185_v25, %v797_v30 }
 0x7f3   : > { %v802_v34 = vsel %vm801_vm13, %v1185_v25, %v798_v31 }
 0x7f4   : > { %v803_v35 = vmul.f32 %v802_v34, %v786_v14 }
 0x7f6   : > { %v808_v37 = vmul.f32 %v1160_v32, %v803_v35 }
 0x7f8   : > { %v813_v38 = vadd.f32 %v1161_v36, %v808_v37 }
 0x7fa   : > { %v814_v39 = vpack.c.bf16 %v813_v38, %v813_v38 }
 0x7fc   : > { %1051 = vmatmul.msk.bf16.vlgmr.msra.gmra.mxu1 %vm411_vm0, %v814_v39 }
 0x879   : > { %v847_v43 = vpop.f32.mrf.mxu1 }
 0x87a   : > { %v848_v44 = vadd.f32 %v1162_v42, %v847_v43 }
 0x87c   : > { %v851_v33 = vmax.f32 %v848_v44, 0.0 }
 0x87e   : > { %v852_v45 = vpack.c.bf16 %v851_v33, %v851_v33 }
 0x880   : > { %929 = vmatmul.bf16.vlgmr.msrb.gmra.mxu3 %v852_v45 }
 0x881   : > { %v849_v46 = vpop.f32.mrf.mxu1 }
 0x903   : > { %v930_v48 = vpop.f32.mrf.mxu3 }
 0x904   : > { %v931_v49 = vadd.f32 %v1163_v47, %v930_v48 }
 0x906   : > { %v934_v50 = vadd.f32 %v931_v49, %v1457_v9 }
 0x908   : > { %935 = vst.msk [vmem:[%s404_s18] sm:$0xff] %vm411_vm0, %v934_v50 }
 0x909   : > { %1213 = shalt.err (!%p1210_p3)
}
 0x90a   : > { %1102 = dma.vmem_to_hbm [thread:$0]  (%p1369_p5), %s950_s19, 128, %s952_s1, %s937_s25  }
 0x90b   : > { %v932_v51 = vpop.f32.mrf.mxu3 }
 0x90c PF: > { %p1108_p4 = scmp.ge.s32.totalorder %s1248_s24, 2  ;;  %s963_s20 = sand.u32 1, %s1236_s21  }
 0x90d   : > { %s964_s17 = scalar_lea.sflag [#allocation4], %s963_s20 }
 0x90e   : > { %p1105_p7 = pnand %p1108_p4, %p1373_p6 }
 0x910   : > { %p1106_p8 = pneg %p1105_p7 }
 0x912   : > { %1231 = dma.done.wait (%p1106_p8), %s964_s17, 128  }
 0x913   : > { %1233 = vsyncadd (%p1106_p8), %s964_s17, 4294967168  ;;  %p22_p9 = scmp.ge.s32.totalorder %s1356_s27, 4   ;;  %s1563_s21 = smov %s1240_s22 }
 0x914   : > { %s1564_s22 = smov %s1244_s23  ;;  %s1565_s23 = smov %s1367_s30 }
 0x915   : > { %s1566_s24 = smov %s1356_s27  ;;  %24 = sbr.rel (!%p22_p9) target bundleno = 7 (0x7), region = 103 }
 0x91a   :  { %970 = vsyncpa [#allocation4], 1 }
 0x91b   :  { %972 = vsyncpa [#allocation4 + $0x1], 1 }

</bundles_post_ra>
